<compile_context>
chip_gen: v5e
topology: v5e:2x2
jax: 0.10.0
libtpu: 0.0.40
codegen_flags: <defaults>
</compile_context>

<pallas_src>
import math

import jax
import jax.numpy as jnp
from jax.experimental import pallas as pl
from jax.experimental.pallas import tpu as pltpu


def _polyfit_kernel(w_ref, b_ref, x_ref, o_ref):
    """o[0, :] = sum_k w[k] * x[k, :] + b   (pure VPU, no MXU).

    w_ref: SMEM (K,)        f32   weight vector (Linear weight row)
    b_ref: SMEM (1,)        f32   bias
    x_ref: VMEM (K, tile_n) f32   features on sublanes, samples on lanes
    o_ref: VMEM (1, tile_n) f32   lane-dense output slab
    """
    k_dim = x_ref.shape[0]
    # K is small and static -> unrolled scalar-broadcast FMAs on the VPU.
    acc = x_ref[0:1, :] * w_ref[0]
    for k in range(1, k_dim):
        acc = acc + x_ref[k:k + 1, :] * w_ref[k]
    o_ref[...] = acc + b_ref[0]


def polyfit_forward(x, weight, bias, *, tile_n=2048):
    """Forward of PolyFit == nn.Linear(k, 1): y = x @ weight.T + bias.

    x: (N, K), weight: (1, K), bias: (1,)  ->  y: (N, 1) float32
    """
    N, K = x.shape
    w_vec = jnp.asarray(weight, jnp.float32).reshape(K)
    b_vec = jnp.asarray(bias, jnp.float32).reshape(1)

    # Lane-dense layout: put N on the lane (last) axis, K on sublanes.
    n_pad128 = ((N + 127) // 128) * 128          # lane multiple
    tn = min(tile_n, n_pad128)                   # tile width along N
    n_pad = ((N + tn - 1) // tn) * tn            # pad N to a whole # of tiles
    xt = jnp.pad(jnp.asarray(x, jnp.float32).T, ((0, 0), (0, n_pad - N)))

    out = pl.pallas_call(
        _polyfit_kernel,
        out_shape=jax.ShapeDtypeStruct((1, n_pad), jnp.float32),
        grid=(n_pad // tn,),
        in_specs=[
            pl.BlockSpec(memory_space=pltpu.MemorySpace.SMEM),   # w (K,)
            pl.BlockSpec(memory_space=pltpu.MemorySpace.SMEM),   # b (1,)
            pl.BlockSpec((K, tn), lambda i: (0, i)),             # x tile
        ],
        out_specs=pl.BlockSpec((1, tn), lambda i: (0, i)),
        compiler_params=pltpu.CompilerParams(
            dimension_semantics=("parallel",)),
    )(w_vec, b_vec, xt)

    # Back to the torch Linear contract: (N, 1).
    return out[0, :N].reshape(N, 1)


if __name__ == "__main__":
    # PolyFit(k) == nn.Linear(k, 1): weight (1, k), bias (1,)
    k = 8          # polynomial feature dimension
    batch = 16     # number of samples

    key = jax.random.PRNGKey(0)
    kx, kw, kb = jax.random.split(key, 3)

    # Deterministic init mimicking torch.nn.Linear default:
    # U(-1/sqrt(k), 1/sqrt(k)) for both weight and bias.
    bound = 1.0 / math.sqrt(k)
    x = jax.random.normal(kx, (batch, k), dtype=jnp.float32)
    weight = jax.random.uniform(kw, (1, k), dtype=jnp.float32,
                                minval=-bound, maxval=bound)
    bias = jax.random.uniform(kb, (1,), dtype=jnp.float32,
                              minval=-bound, maxval=bound)

    y = polyfit_forward(x, weight, bias)
    jax.block_until_ready(y)

    # Sanity check against plain JAX reference of nn.Linear forward.
    y_ref = x @ weight.T + bias
    assert y.shape == (batch, 1)
    assert jnp.allclose(y, y_ref, atol=1e-5, rtol=1e-5)

    print("KERNEL_OK")
</pallas_src>

<mosaic_0001>
module attributes {stable_mosaic.version = 11 : i64} {
  func.func @_polyfit_kernel(%arg0: i32, %arg1: memref<8xf32, #tpu.memory_space<smem>>, %arg2: memref<1xf32, #tpu.memory_space<smem>>, %arg3: memref<8x128xf32, #tpu.memory_space<vmem>>, %arg4: memref<1x128xf32, #tpu.memory_space<vmem>>) attributes {dimension_semantics = [#tpu.dimension_semantics<parallel>], iteration_bounds = array<i64: 1>, scalar_prefetch = 0 : i64, scratch_operands = 0 : i64, tpu.core_type = #tpu.core_type<tc>, window_params = [{transform_indices = @transform_0, window_bounds = array<i64: 8>}, {transform_indices = @transform_1, window_bounds = array<i64: 1>}, {transform_indices = @transform_2, window_bounds = array<i64: 8, 128>}, {transform_indices = @transform_3, window_bounds = array<i64: 1, 128>}]} {
    %c0 = arith.constant 0 : index
    %c0_0 = arith.constant 0 : index
    %0 = vector.load %arg3[%c0, %c0_0] : memref<8x128xf32, #tpu.memory_space<vmem>>, vector<1x128xf32>
    %c0_1 = arith.constant 0 : index
    %1 = memref.load %arg1[%c0_1] : memref<8xf32, #tpu.memory_space<smem>>
    %2 = vector.broadcast %1 : f32 to vector<1x128xf32>
    %3 = arith.mulf %0, %2 : vector<1x128xf32>
    %c1 = arith.constant 1 : index
    %c0_2 = arith.constant 0 : index
    %4 = vector.load %arg3[%c1, %c0_2] : memref<8x128xf32, #tpu.memory_space<vmem>>, vector<1x128xf32>
    %c1_3 = arith.constant 1 : index
    %5 = memref.load %arg1[%c1_3] : memref<8xf32, #tpu.memory_space<smem>>
    %6 = vector.broadcast %5 : f32 to vector<1x128xf32>
    %7 = arith.mulf %4, %6 : vector<1x128xf32>
    %8 = arith.addf %3, %7 : vector<1x128xf32>
    %c2 = arith.constant 2 : index
    %c0_4 = arith.constant 0 : index
    %9 = vector.load %arg3[%c2, %c0_4] : memref<8x128xf32, #tpu.memory_space<vmem>>, vector<1x128xf32>
    %c2_5 = arith.constant 2 : index
    %10 = memref.load %arg1[%c2_5] : memref<8xf32, #tpu.memory_space<smem>>
    %11 = vector.broadcast %10 : f32 to vector<1x128xf32>
    %12 = arith.mulf %9, %11 : vector<1x128xf32>
    %13 = arith.addf %8, %12 : vector<1x128xf32>
    %c3 = arith.constant 3 : index
    %c0_6 = arith.constant 0 : index
    %14 = vector.load %arg3[%c3, %c0_6] : memref<8x128xf32, #tpu.memory_space<vmem>>, vector<1x128xf32>
    %c3_7 = arith.constant 3 : index
    %15 = memref.load %arg1[%c3_7] : memref<8xf32, #tpu.memory_space<smem>>
    %16 = vector.broadcast %15 : f32 to vector<1x128xf32>
    %17 = arith.mulf %14, %16 : vector<1x128xf32>
    %18 = arith.addf %13, %17 : vector<1x128xf32>
    %c4 = arith.constant 4 : index
    %c0_8 = arith.constant 0 : index
    %19 = vector.load %arg3[%c4, %c0_8] : memref<8x128xf32, #tpu.memory_space<vmem>>, vector<1x128xf32>
    %c4_9 = arith.constant 4 : index
    %20 = memref.load %arg1[%c4_9] : memref<8xf32, #tpu.memory_space<smem>>
    %21 = vector.broadcast %20 : f32 to vector<1x128xf32>
    %22 = arith.mulf %19, %21 : vector<1x128xf32>
    %23 = arith.addf %18, %22 : vector<1x128xf32>
    %c5 = arith.constant 5 : index
    %c0_10 = arith.constant 0 : index
    %24 = vector.load %arg3[%c5, %c0_10] : memref<8x128xf32, #tpu.memory_space<vmem>>, vector<1x128xf32>
    %c5_11 = arith.constant 5 : index
    %25 = memref.load %arg1[%c5_11] : memref<8xf32, #tpu.memory_space<smem>>
    %26 = vector.broadcast %25 : f32 to vector<1x128xf32>
    %27 = arith.mulf %24, %26 : vector<1x128xf32>
    %28 = arith.addf %23, %27 : vector<1x128xf32>
    %c6 = arith.constant 6 : index
    %c0_12 = arith.constant 0 : index
    %29 = vector.load %arg3[%c6, %c0_12] : memref<8x128xf32, #tpu.memory_space<vmem>>, vector<1x128xf32>
    %c6_13 = arith.constant 6 : index
    %30 = memref.load %arg1[%c6_13] : memref<8xf32, #tpu.memory_space<smem>>
    %31 = vector.broadcast %30 : f32 to vector<1x128xf32>
    %32 = arith.mulf %29, %31 : vector<1x128xf32>
    %33 = arith.addf %28, %32 : vector<1x128xf32>
    %c7 = arith.constant 7 : index
    %c0_14 = arith.constant 0 : index
    %34 = vector.load %arg3[%c7, %c0_14] : memref<8x128xf32, #tpu.memory_space<vmem>>, vector<1x128xf32>
    %c7_15 = arith.constant 7 : index
    %35 = memref.load %arg1[%c7_15] : memref<8xf32, #tpu.memory_space<smem>>
    %36 = vector.broadcast %35 : f32 to vector<1x128xf32>
    %37 = arith.mulf %34, %36 : vector<1x128xf32>
    %38 = arith.addf %33, %37 : vector<1x128xf32>
    %c0_16 = arith.constant 0 : index
    %39 = memref.load %arg2[%c0_16] : memref<1xf32, #tpu.memory_space<smem>>
    %40 = vector.broadcast %39 : f32 to vector<1x128xf32>
    %41 = arith.addf %38, %40 : vector<1x128xf32>
    %c0_17 = arith.constant 0 : index
    %c0_18 = arith.constant 0 : index
    %42 = vector.load %arg4[%c0_17, %c0_18] : memref<1x128xf32, #tpu.memory_space<vmem>>, vector<1x128xf32>
    tpu.vector_store %arg4[%c0_17, %c0_18], %41 {strides = array<i32>} : memref<1x128xf32, #tpu.memory_space<vmem>>, vector<1x128xf32>,
    return
  }
  func.func @transform_0(%arg0: i32) -> i32 {
    %c0_i32 = arith.constant 0 : i32
    %c0_i32_0 = arith.constant 0 : i32
    return %c0_i32 : i32
  }
  func.func @transform_1(%arg0: i32) -> i32 {
    %c0_i32 = arith.constant 0 : i32
    %c0_i32_0 = arith.constant 0 : i32
    return %c0_i32 : i32
  }
  func.func @transform_2(%arg0: i32) -> (i32, i32) {
    %c0_i32 = arith.constant 0 : i32
    %c0_i32_0 = arith.constant 0 : i32
    return %c0_i32, %arg0 : i32, i32
  }
  func.func @transform_3(%arg0: i32) -> (i32, i32) {
    %c0_i32 = arith.constant 0 : i32
    %c0_i32_0 = arith.constant 0 : i32
    return %c0_i32, %arg0 : i32, i32
  }
}

</mosaic_0001>

<bundles_post_ra>
// kernel: tpu_custom_call.1
= control target key start
LH: loop header
LB: loop body
LE: loop exit
PB: predicated region body
PF: predicated region fallthrough
CT: control target
= control target key end

     0   :  { %9 = vsyncpa [#allocation6], 0  ;;  %s215_s0 = inlined_call_operand.vmem [shape: f32[8], index: 0, kind: input, shape index: {}]   ;;  %s216_s1 = inlined_call_operand.<no memory space> [shape: f32[1], index: 1, kind: input, shape index: {}]   ;;  %s217_s2 = inlined_call_operand.hbm [shape: f32[8,128], index: 2, kind: input, shape index: {}]   ;;  %s218_s3 = inlined_call_operand.hbm [shape: f32[1,128], index: 3, kind: output, shape index: {}]  }
   0x1   :  { %10 = vsyncpa [#allocation4], 0 }
   0x2   :  { %11 = vsyncpa [#allocation5], 0  ;;  %s17_s14 = sshll.u32 %s215_s0, 4  ;;  %s28_s17 = sshll.u32 %s217_s2, 4  ;;  %s18_s14 = int_to_ptr.vmem [resolvable:$true] %s17_s14  ;;  %s29_s17 = int_to_ptr.hbm [resolvable:$true] %s28_s17 }
   0x3   :  { %s180_s18 = smov [#allocation3]   ;;  %s181_s19 = smov [#allocation7]  }
   0x4   :  { %20 = dma.vmem_to_smem %s18_s14, 16, %s180_s18, [#allocation6]  }
   0x5   :  { %s30_s20 = sshll.u32 %s181_s19, 4  ;;  %s31_s20 = int_to_ptr.vmem [resolvable:$true] %s30_s20 }
   0x6   :  { %33 = dma.hbm_to_vmem [thread:$0]  %s29_s17, 128, %s31_s20, [#allocation4]  }
   0x7   :  { %174 = dma.done.wait [#allocation6], 16  }
   0x8   :  { %175 = vsyncadd [#allocation6], 4294967280 }
   0x9   :  { %176 = dma.done.wait [#allocation4], 128  }
   0xa   :  { %177 = vsyncadd [#allocation4], 4294967168 }
   0xb   :  { %42 = sfence }
   0xc   :  { %s44_s21 = sld [smem:[#allocation3]]  ;;  %v43_v0 = vld [vmem:[#allocation7] sm:$0x1]  ;;  %v47_v1 = vld [vmem:[#allocation7 + $0x1] sm:$0x1]  ;;  %v83_v30 = vstv %s216_s1  ;;  %s182_s29 = smov [#allocation8]  }
   0xd   :  { %s104_s22 = sld [smem:[#allocation3 + $0x1]]  ;;  %v52_v3 = vld [vmem:[#allocation7 + $0x2] sm:$0x1]  ;;  %v57_v6 = vld [vmem:[#allocation7 + $0x3] sm:$0x1]  ;;  %s91_s30 = sshll.u32 %s182_s29, 4  ;;  %s92_s30 = int_to_ptr.vmem [resolvable:$true] %s91_s30 }
   0xe   :  { %s105_s0 = sld [smem:[#allocation3 + $0x2]]  ;;  %v62_v11 = vld [vmem:[#allocation7 + $0x4] sm:$0x1]  ;;  %v67_v15 = vld [vmem:[#allocation7 + $0x5] sm:$0x1]  ;;  %s93_s6 = sshll.u32 %s218_s3, 4  ;;  %s94_s6 = int_to_ptr.hbm [resolvable:$true] %s93_s6 }
   0xf   :  { %s106_s23 = sld [smem:[#allocation3 + $0x3]]  ;;  %v72_v19 = vld [vmem:[#allocation7 + $0x6] sm:$0x1]  ;;  %v77_v23 = vld [vmem:[#allocation7 + $0x7] sm:$0x1] }
  0x10   :  { %s107_s24 = sld [smem:[#allocation3 + $0x4]] }
  0x11   :  { %s108_s2 = sld [smem:[#allocation3 + $0x5]] }
  0x12   :  { %v45_v2 = vstv %s44_s21  ;;  %s109_s25 = sld [smem:[#allocation3 + $0x6]] }
  0x13   :  { %v46_v4 = vmul.f32 %v45_v2, %v43_v0  ;;  %v49_v5 = vstv %s104_s22  ;;  %s110_s26 = sld [smem:[#allocation3 + $0x7]] }
  0x14   :  { %v50_v7 = vmul.f32 %v49_v5, %v47_v1  ;;  %v54_v8 = vstv %s105_s0 }
  0x15   :  { %v55_v9 = vmul.f32 %v54_v8, %v52_v3  ;;  %v59_v10 = vstv %s106_s23 }
  0x16   :  { %v51_v12 = vadd.f32 %v50_v7, %v46_v4  ;;  %v60_v13 = vmul.f32 %v59_v10, %v57_v6  ;;  %v64_v14 = vstv %s107_s24 }
  0x17   :  { %v69_v16 = vstv %s108_s2  ;;  %v65_v18 = vmul.f32 %v64_v14, %v62_v11 }
  0x18   :  { %v56_v17 = vadd.f32 %v55_v9, %v51_v12  ;;  %v74_v20 = vstv %s109_s25  ;;  %v70_v22 = vmul.f32 %v69_v16, %v67_v15 }
  0x19   :  { %v79_v24 = vstv %s110_s26  ;;  %v75_v26 = vmul.f32 %v74_v20, %v72_v19 }
  0x1a   :  { %v61_v21 = vadd.f32 %v60_v13, %v56_v17  ;;  %v80_v28 = vmul.f32 %v79_v24, %v77_v23 }
  0x1c   :  { %v66_v25 = vadd.f32 %v65_v18, %v61_v21 }
  0x1e   :  { %v71_v27 = vadd.f32 %v70_v22, %v66_v25 }
  0x20   :  { %v76_v29 = vadd.f32 %v75_v26, %v71_v27 }
  0x22   :  { %v81_v31 = vadd.f32 %v80_v28, %v76_v29 }
  0x24   :  { %v84_v32 = vadd.f32 %v83_v30, %v81_v31 }
  0x26   :  { %85 = vst [vmem:[#allocation8] sm:$0x1] %v84_v32 }
  0x27   :  { %96 = dma.vmem_to_hbm [thread:$0]  %s92_s30, 16, %s94_s6, [#allocation5]  }
  0x28   :  { %178 = dma.done.wait [#allocation5], 16  }
  0x29   :  { %179 = vsyncadd [#allocation5], 4294967280 }
  0x2a   :  { %101 = vsyncpa [#allocation4], 1 }
  0x2b   :  { %102 = vsyncpa [#allocation5], 1 }
  0x2c   :  { %103 = vsyncpa [#allocation6], 1 }

</bundles_post_ra>
